<compile_context>
chip_gen: v6e
topology: v6e:2x2x1
jax: 0.10.0
libtpu: 0.0.40
codegen_flags: <defaults>
</compile_context>

<pallas_src>
import math
from functools import partial

import jax
import jax.numpy as jnp
from jax.experimental import pallas as pl
from jax.experimental.pallas import tpu as pltpu

# ----- toy problem sizes (consistent with the module) -----
B = 2            # batch
N_VARS = 4       # channels / variables
SEQ_LEN = 16     # input sequence length
PATCH_LEN = 8
STRIDE = 8
PADDING = 8      # TimeXer uses padding == stride
D_MODEL = 32
DROPOUT = 0.1    # identity in eval-mode forward


def _round_up(x, m):
    return ((x + m - 1) // m) * m


def _patch_embedding_kernel(x_ref, wbd_ref, pe_ref, out_ref, *,
                            seq_len, patch_len, stride, n_patches):
    """One row-block of series -> embedded patches, lane-dense.

    x_ref  : (block_rows, seq_len)                        raw series, one per row
    wbd_ref: (n_patches*patch_len, n_out_pad)             block-diag weight, zero-padded to 128*k lanes
    pe_ref : (1, n_out_pad)                               flattened positional embedding, zero-padded
    out_ref: (block_rows, n_out_pad)                      lane-dense embedded patches
    """
    x = x_ref[...]
    rows = x.shape[0]
    k_total = n_patches * patch_len

    if stride == patch_len:
        # ReplicationPad1d((0, padding)) + unfold(patch_len, stride=patch_len) is a contiguous
        # reshape of the padded sequence: a single concat builds all patches at once.
        pad_w = k_total - seq_len
        if pad_w > 0:
            last = x[:, seq_len - 1:seq_len]                      # (rows, 1) replication source
            patches = jnp.concatenate(
                [x, jnp.broadcast_to(last, (rows, pad_w))], axis=1)
        else:
            patches = x[:, :k_total]
    else:
        # General (possibly overlapping) unfold fallback: static trace-time slices.
        last = x[:, seq_len - 1:seq_len]
        pieces = []
        for p in range(n_patches):
            start = p * stride
            end = start + patch_len
            if end <= seq_len:
                pieces.append(x[:, start:end])
            else:
                n_valid = max(seq_len - start, 0)
                pad = jnp.broadcast_to(last, (rows, patch_len - n_valid))
                pieces.append(jnp.concatenate([x[:, start:seq_len], pad], axis=1)
                              if n_valid > 0 else pad)
        patches = jnp.concatenate(pieces, axis=1)

    # One MXU matmul for all patches (block-diagonal weight) + positional embedding,
    # single unmasked lane-dense store (padded columns are zero and sliced off by the wrapper).
    out_ref[...] = (
        jnp.dot(patches, wbd_ref[...], preferred_element_type=jnp.float32)
        + pe_ref[...])


def init_patch_embedding_params(w_value_t, pe, *, seq_len, patch_len, stride,
                                padding, d_model):
    """ONE-TIME parameter preparation (hoisted out of the per-forward path).

    w_value_t: (patch_len, d_model) — nn.Linear(patch_len, d_model, bias=False).weight, transposed.
    pe       : (>= n_patches, d_model) positional-embedding buffer.
    """
    n_patches = (seq_len + padding - patch_len) // stride + 1
    n_out = n_patches * d_model
    n_out_pad = _round_up(n_out, 128)          # lane-dense output width

    # Block-diagonal value-embedding weight so the kernel runs a single matmul, zero-padded
    # on the lane axis to the padded output width.
    wbd = jnp.kron(jnp.eye(n_patches, dtype=w_value_t.dtype), w_value_t)
    wbd = jnp.pad(wbd, ((0, 0), (0, n_out_pad - n_out)))
    pe_flat = jnp.pad(pe[:n_patches].reshape(1, n_out),
                      ((0, 0), (0, n_out_pad - n_out)))

    return dict(wbd=wbd, pe_flat=pe_flat,
                seq_len=seq_len, patch_len=patch_len, stride=stride,
                padding=padding, d_model=d_model,
                n_patches=n_patches, n_out=n_out, n_out_pad=n_out_pad)


def patch_embedding(x, params, *, block_rows=512):
    """x: (B, n_vars, seq_len) f32. Returns (out (B*n_vars, n_patches, d_model), n_vars)."""
    b, n_vars, t = x.shape
    assert t == params["seq_len"], "seq_len drift vs. prepared params"
    n_rows = b * n_vars
    x2d = x.reshape(n_rows, t)

    # Row-block grid: big batches get 512-row tiles sharded "parallel" across TCs;
    # the toy case collapses to one full-extent block (grid of 1).
    br = block_rows if n_rows >= block_rows else _round_up(n_rows, 8)
    rows_p = _round_up(n_rows, br)
    if rows_p != n_rows:
        x2d = jnp.pad(x2d, ((0, rows_p - n_rows), (0, 0)))

    n_patches = params["n_patches"]
    d_model = params["d_model"]
    n_out = params["n_out"]
    n_out_pad = params["n_out_pad"]
    kd = n_patches * params["patch_len"]

    kernel = partial(_patch_embedding_kernel,
                     seq_len=t, patch_len=params["patch_len"],
                     stride=params["stride"], n_patches=n_patches)

    out_flat = pl.pallas_call(
        kernel,
        out_shape=jax.ShapeDtypeStruct((rows_p, n_out_pad), jnp.float32),
        grid_spec=pl.GridSpec(
            grid=(rows_p // br,),
            in_specs=[
                pl.BlockSpec((br, t), lambda i: (i, 0)),            # x rows for this block
                pl.BlockSpec((kd, n_out_pad), lambda i: (0, 0)),    # resident block-diag weight
                pl.BlockSpec((1, n_out_pad), lambda i: (0, 0)),     # resident flattened PE
            ],
            out_specs=pl.BlockSpec((br, n_out_pad), lambda i: (i, 0)),
        ),
        compiler_params=pltpu.CompilerParams(
            dimension_semantics=("parallel",)),
        cost_estimate=pl.CostEstimate(
            flops=2 * rows_p * kd * n_out_pad,
            transcendentals=0,
            bytes_accessed=4 * (rows_p * t + kd * n_out_pad + n_out_pad
                                + rows_p * n_out_pad)),
    )(x2d, params["wbd"], params["pe_flat"])

    out = out_flat[:n_rows, :n_out].reshape(n_rows, n_patches, d_model)
    # Dropout: eval-mode identity.
    return out, n_vars


# ----- PositionalEmbedding buffer (precomputed, mirrors the module's __init__) -----
def _positional_embedding(n_positions, d_model):
    position = jnp.arange(n_positions, dtype=jnp.float32)[:, None]
    div_term = jnp.exp(jnp.arange(0, d_model, 2, dtype=jnp.float32)
                       * (-math.log(10000.0) / d_model))
    pe = jnp.zeros((n_positions, d_model), jnp.float32)
    pe = pe.at[:, 0::2].set(jnp.sin(position * div_term))
    pe = pe.at[:, 1::2].set(jnp.cos(position * div_term))
    return pe


# ----- pure-JAX reference of the PyTorch forward -----
def _reference(x, w_value_t, pe, *, patch_len, stride, padding):
    b, n_vars, t = x.shape
    n_patches = (t + padding - patch_len) // stride + 1
    last = x[:, :, -1:]
    x_pad = jnp.concatenate(
        [x, jnp.broadcast_to(last, (b, n_vars, padding))], axis=-1)
    patches = jnp.stack(
        [x_pad[:, :, p * stride:p * stride + patch_len] for p in range(n_patches)],
        axis=2)                                           # (B, n_vars, n_patches, patch_len)
    patches = patches.reshape(b * n_vars, n_patches, patch_len)
    return patches @ w_value_t + pe[None, :n_patches, :], n_vars


if __name__ == "__main__":
    key = jax.random.PRNGKey(0)
    kx, kw = jax.random.split(key)

    x = jax.random.normal(kx, (B, N_VARS, SEQ_LEN), jnp.float32)
    bound = 1.0 / math.sqrt(PATCH_LEN)
    # nn.Linear(patch_len, d_model, bias=False).weight has shape (d_model, patch_len); stored transposed.
    w_value_t = jax.random.uniform(kw, (PATCH_LEN, D_MODEL), jnp.float32, -bound, bound)
    pe = _positional_embedding(64, D_MODEL)   # small slice of the max_len=5000 buffer

    # One-time parameter preparation (kron / PE flattening hoisted out of the forward path).
    params = init_patch_embedding_params(
        w_value_t, pe, seq_len=SEQ_LEN, patch_len=PATCH_LEN, stride=STRIDE,
        padding=PADDING, d_model=D_MODEL)

    out, n_vars = patch_embedding(x, params)
    out = jax.block_until_ready(out)

    ref_out, ref_n_vars = _reference(x, w_value_t, pe,
                                     patch_len=PATCH_LEN, stride=STRIDE, padding=PADDING)
    n_patches = params["n_patches"]
    assert n_vars == ref_n_vars == N_VARS
    assert out.shape == (B * N_VARS, n_patches, D_MODEL)
    assert jnp.allclose(out, ref_out, atol=1e-5, rtol=1e-5), "output mismatch"

    print("KERNEL_OK")
</pallas_src>

<mosaic_0001>
module attributes {stable_mosaic.version = 11 : i64} {
  func.func @_patch_embedding_kernel(%arg0: i32, %arg1: memref<8x16xf32, #tpu.memory_space<vmem>>, %arg2: memref<24x128xf32, #tpu.memory_space<vmem>>, %arg3: memref<1x128xf32, #tpu.memory_space<vmem>>, %arg4: memref<8x128xf32, #tpu.memory_space<vmem>>) attributes {dimension_semantics = [#tpu.dimension_semantics<parallel>], iteration_bounds = array<i64: 1>, scalar_prefetch = 0 : i64, scratch_operands = 0 : i64, tpu.core_type = #tpu.core_type<tc>, window_params = [{transform_indices = @transform_0, window_bounds = array<i64: 8, 16>}, {pipeline_mode = #tpu.pipeline_mode<synchronous>, transform_indices = @transform_1, window_bounds = array<i64: 24, 128>}, {pipeline_mode = #tpu.pipeline_mode<synchronous>, transform_indices = @transform_2, window_bounds = array<i64: 1, 128>}, {transform_indices = @transform_3, window_bounds = array<i64: 8, 128>}]} {
    %c0 = arith.constant 0 : index
    %c0_0 = arith.constant 0 : index
    %0 = vector.load %arg1[%c0, %c0_0] : memref<8x16xf32, #tpu.memory_space<vmem>>, vector<8x16xf32>
    %1 = vector.extract_strided_slice %0 {offsets = [0, 15], sizes = [8, 1], strides = [1, 1]} : vector<8x16xf32> to vector<8x1xf32>
    %2 = vector.shape_cast %1 : vector<8x1xf32> to vector<8x1xf32>
    %3 = vector.broadcast %2 : vector<8x1xf32> to vector<8x8xf32>
    %4 = tpu.concatenate %0, %3 in 1 : vector<8x16xf32>, vector<8x8xf32> -> vector<8x24xf32>
    %c0_1 = arith.constant 0 : index
    %c0_2 = arith.constant 0 : index
    %5 = vector.load %arg2[%c0_1, %c0_2] : memref<24x128xf32, #tpu.memory_space<vmem>>, vector<24x128xf32>
    %cst = arith.constant dense<0.000000e+00> : vector<8x128xf32>
    %6 = tpu.matmul %4, %5, %cst {dimension_numbers = #tpu.dot_dimension_numbers<[1], [0], [0], [1], [0, 0, 1, 1], [], []>} : vector<8x24xf32>, vector<24x128xf32>, vector<8x128xf32> -> vector<8x128xf32>
    %c0_3 = arith.constant 0 : index
    %c0_4 = arith.constant 0 : index
    %7 = vector.load %arg3[%c0_3, %c0_4] : memref<1x128xf32, #tpu.memory_space<vmem>>, vector<1x128xf32>
    %8 = vector.broadcast %7 : vector<1x128xf32> to vector<8x128xf32>
    %9 = arith.addf %6, %8 : vector<8x128xf32>
    %c0_5 = arith.constant 0 : index
    %c0_6 = arith.constant 0 : index
    %10 = vector.load %arg4[%c0_5, %c0_6] : memref<8x128xf32, #tpu.memory_space<vmem>>, vector<8x128xf32>
    tpu.vector_store %arg4[%c0_5, %c0_6], %9 {strides = array<i32>} : memref<8x128xf32, #tpu.memory_space<vmem>>, vector<8x128xf32>,
    return
  }
  func.func @transform_0(%arg0: i32) -> (i32, i32) {
    %c0_i32 = arith.constant 0 : i32
    %c0_i32_0 = arith.constant 0 : i32
    return %arg0, %c0_i32 : i32, i32
  }
  func.func @transform_1(%arg0: i32) -> (i32, i32) {
    %c0_i32 = arith.constant 0 : i32
    %c0_i32_0 = arith.constant 0 : i32
    %c0_i32_1 = arith.constant 0 : i32
    return %c0_i32, %c0_i32_0 : i32, i32
  }
  func.func @transform_2(%arg0: i32) -> (i32, i32) {
    %c0_i32 = arith.constant 0 : i32
    %c0_i32_0 = arith.constant 0 : i32
    %c0_i32_1 = arith.constant 0 : i32
    return %c0_i32, %c0_i32_0 : i32, i32
  }
  func.func @transform_3(%arg0: i32) -> (i32, i32) {
    %c0_i32 = arith.constant 0 : i32
    %c0_i32_0 = arith.constant 0 : i32
    return %arg0, %c0_i32 : i32, i32
  }
}

</mosaic_0001>

<bundles_post_ra>
// kernel: tpu_custom_call.1
= control target key start
LH: loop header
LB: loop body
LE: loop exit
PB: predicated region body
PF: predicated region fallthrough
CT: control target
= control target key end

     0   :  { %8 = vsyncpa [#allocation3], 0  ;;  %s280_s0 = inlined_call_operand.hbm [shape: f32[8,16], index: 0, kind: input, shape index: {}]   ;;  %s281_s1 = inlined_call_operand.hbm [shape: f32[24,128], index: 1, kind: input, shape index: {}]   ;;  %s282_s2 = inlined_call_operand.vmem [shape: f32[1,128], index: 2, kind: input, shape index: {}]   ;;  %s283_s3 = inlined_call_operand.hbm [shape: f32[8,128], index: 3, kind: output, shape index: {}]  }
   0x1   :  { %9 = vsyncpa [#allocation6], 0 }
   0x2   :  { %10 = vsyncpa [#allocation4], 0  ;;  %s240_s12 = smov [#allocation2]   ;;  %s241_s14 = smov [#allocation5]  }
   0x3   :  { %s17_s13 = sshll.u32 %s240_s12, 4  ;;  %s26_s15 = sshll.u32 %s241_s14, 4  ;;  %s18_s13 = int_to_ptr.vmem [resolvable:$true] %s17_s13  ;;  %s27_s15 = int_to_ptr.vmem [resolvable:$true] %s26_s15 }
   0x4   :  { %s182_s16 = scalar_lea.vmem %s18_s13, 128  ;;  %p187_p1 = scmp.lt.s32.totalorder %s18_s13, %s18_s13 }
   0x5   :  { %p183_p0 = scmp.ne.s32.totalorder %s18_s13, %s182_s16  ;;  %p188_p2 = scmp.lt.s32.totalorder %s182_s16, %s182_s16 }
   0x7   :  { %p189_p3 = por %p188_p2, %p187_p1 }
   0x9   :  { %p190_p4 = pnand %p189_p3, %p183_p0 }
   0xb   :  { %193 = shalt.err (!%p190_p4)
}
   0xc   :  { %20 = dma.hbm_to_vmem [thread:$0]  %s280_s0, 128, %s18_s13, [#allocation3]  }
   0xd   :  { %s202_s19 = scalar_lea.vmem %s27_s15, 384  ;;  %p207_p6 = scmp.lt.s32.totalorder %s27_s15, %s27_s15 }
   0xe   :  { %p203_p5 = scmp.ne.s32.totalorder %s27_s15, %s202_s19  ;;  %p208_p7 = scmp.lt.s32.totalorder %s202_s19, %s202_s19 }
  0x10   :  { %p209_p8 = por %p208_p7, %p207_p6 }
  0x12   :  { %p210_p9 = pnand %p209_p8, %p203_p5 }
  0x14   :  { %213 = shalt.err (!%p210_p9)
}
  0x15   :  { %s242_s20 = smov 128   ;;  %s243_s21 = smov 8  }
  0x16   :  { %32 = dma.hbm_to_vmem [thread:$0]  %s281_s1, 384, %s27_s15, [#allocation6], %s242_s20, %s242_s20, %s243_s21  }
  0x17   :  { %234 = dma.done.wait [#allocation3], 128  }
  0x18   :  { %235 = vsyncadd [#allocation3], 4294967168 }
  0x19   :  { %236 = dma.done.wait [#allocation6], 384  }
  0x1a   :  { %237 = vsyncadd [#allocation6], 4294966912  ;;  %v244_v0 = vmov 15   ;;  %v245_v1 = vmov 0.0   ;;  %vm246_vm0 = vmmov 0   ;;  %v41_v2 = vld [vmem:[#allocation2] sm:$0xff] }
  0x1b   :  { %173 = vset.pattern.permute.xlu0 %v244_v0  ;;  %156 = vmatprep.subr.mxu0 %v245_v1  ;;  %v51_v3 = vld [vmem:[#allocation5 + $0x10] sm:$0xff]  ;;  %v50_v4 = vld [vmem:[#allocation5 + $0x8] sm:$0xff]  ;;  %v49_v5 = vld [vmem:[#allocation5] sm:$0xff]  ;;  %vm47_vm1 = vcmask 130048   ;;  %vm59_vm2 = vcmask 195584   ;;  %s247_s24 = smov [#allocation7]  }
  0x1c   :  { %162 = vmatprep.mubr.msk.f32.mxu0 %vm246_vm0, %v245_v1  ;;  %44 = vperm.xlu0 %173, %v41_v2   ;;  %v150_v8 = vld [vmem:[%s282_s2] ss:$0 sm:$0xff]  ;;  %s140_s25 = sshll.u32 %s247_s24, 4  ;;  %s141_s25 = int_to_ptr.vmem [resolvable:$true] %s140_s25 }
  0x1d   :  { %157 = vmatpush3.msra.mxu0 %v51_v3  ;;  %s214_s26 = scalar_lea.vmem %s141_s25, 128  ;;  %p219_p11 = scmp.lt.s32.totalorder %s141_s25, %s141_s25 }
  0x1e   :  { %158 = vmatprep.subr.mxu0 %v245_v1  ;;  %p215_p10 = scmp.ne.s32.totalorder %s141_s25, %s214_s26  ;;  %p220_p12 = scmp.lt.s32.totalorder %s214_s26, %s214_s26 }
  0x1f   :  { %159 = vmatpush3.msra.mxu0 %v50_v4 }
  0x20   :  { %160 = vmatprep.subr.mxu0 %v245_v1  ;;  %p221_p13 = por %p220_p12, %p219_p11 }
  0x21   :  { %161 = vmatpush3.msra.mxu0 %v49_v5 }
  0x22   :  { %p222_p0 = pnand %p221_p13, %p215_p10 }
  0x97   :  { %v45_v6 = vpop.permute.xlu0 %44 }
  0x98   :  { %v48_v7 = vsel %vm47_vm1, %v41_v2, %v45_v6 }
  0x99   :  { %163 = vmatmul.mubr.msk.f32.vlgmr.msra.gmra.mxu0 %vm59_vm2, %v48_v7 }
 0x159   :  { %v129_v9 = vpop.f32.mrf.mxu0 }
 0x15a   :  { %v130_v10 = vadd.f32 %v150_v8, %v129_v9 }
 0x15b   :  { %v164_v11 = vpop.f32.mrf.mxu0 }
 0x15c   :  { %133 = vst [vmem:[#allocation7] sm:$0xff] %v130_v10 }
 0x15d   :  { %225 = shalt.err (!%p222_p0)
}
 0x15e   :  { %143 = dma.vmem_to_hbm [thread:$0]  %s141_s25, 128, %s283_s3, [#allocation4]  }
 0x15f   :  { %238 = dma.done.wait [#allocation4], 128  }
 0x160   :  { %239 = vsyncadd [#allocation4], 4294967168 }
 0x161   :  { %147 = vsyncpa [#allocation3], 1 }
 0x162   :  { %148 = vsyncpa [#allocation6], 1 }
 0x163   :  { %149 = vsyncpa [#allocation4], 1 }

</bundles_post_ra>
